<compile_context>
chip_gen: v7x
topology: tpu7x:2x2x1
jax: 0.10.0
libtpu: 0.0.40
codegen_flags: <defaults>
</compile_context>

<pallas_src>
import math
import functools

import jax
import jax.numpy as jnp
from jax.experimental import pallas as pl
from jax.experimental.pallas import tpu as pltpu


# MXU input dtype; accumulation and LayerNorm / residual math is f32.
MXU_DTYPE = jnp.bfloat16


# ----------------------------------------------------------------------------
# Hardware queries (used for vmem budgeting and the bf16-exp decision)
# ----------------------------------------------------------------------------

def _device_kind():
    try:
        return jax.devices()[0].device_kind.lower()
    except Exception:
        return ""


def _vmem_capacity_bytes():
    try:
        return int(pltpu.get_tpu_info().vmem_capacity_bytes)
    except Exception:
        kind = _device_kind()
        return (64 << 20) if "v7" in kind else (128 << 20)


def _default_bf16_softmax():
    # bf16 EUP/VPU exists on v6e / v7x; v5e (and older) keep f32 elementwise math.
    kind = _device_kind()
    return ("v6" in kind) or ("v7" in kind)


# ----------------------------------------------------------------------------
# In-kernel helpers
# ----------------------------------------------------------------------------

def _ln(v, g, b, eps):
    """LayerNorm over last dim (biased variance, like torch.nn.LayerNorm)."""
    mu = jnp.mean(v, axis=-1, keepdims=True)
    var = jnp.mean((v - mu) * (v - mu), axis=-1, keepdims=True)
    return (v - mu) * jax.lax.rsqrt(var + eps) * g + b


# ----------------------------------------------------------------------------
# Fused EncoderLayer kernel: grid = (batch, query-tiles)
# ----------------------------------------------------------------------------

def _encoder_layer_kernel(x_ref, wq_ref, bq_ref, wkv_ref, bkv_ref,
                          wo_ref, bo_ref, ln1_g_ref, ln1_b_ref,
                          w1_ref, b1_ref, w2_ref, b2_ref,
                          ln2_g_ref, ln2_b_ref, fn_g_ref, fn_b_ref,
                          *outs_and_scratch,
                          n_heads, scale, eps, out_attn, bf16_softmax,
                          apply_final_norm):
    if out_attn:
        o_ref, attn_ref, k_scr, v_scr = outs_and_scratch
    else:
        o_ref, k_scr, v_scr = outs_and_scratch
        attn_ref = None

    L, D = k_scr.shape
    tq = o_ref.shape[1]
    E = D // n_heads
    qi = pl.program_id(1)
    # bf16 exp only on the no-attention-output fast path (attention maps stay f32-exact
    # up to the bf16 storage cast when they are requested).
    soft_bf16 = bf16_softmax and not out_attn

    # --- K/V projection for the whole sequence, once per batch element -------
    @pl.when(qi == 0)
    def _():
        x_all = x_ref[0].astype(MXU_DTYPE)                            # (L, D)
        kv = jnp.dot(x_all, wkv_ref[...], preferred_element_type=jnp.float32)
        kv = kv + bkv_ref[...]                                        # (L, 2D) f32
        k_scr[...] = kv[:, :D].astype(MXU_DTYPE)
        v_scr[...] = kv[:, D:].astype(MXU_DTYPE)

    # --- Query projection for this row tile ----------------------------------
    row0 = pl.multiple_of(qi * tq, tq)
    x_tile = x_ref[0, pl.ds(row0, tq), :]                             # (tq, D) f32
    q = jnp.dot(x_tile.astype(MXU_DTYPE), wq_ref[...],
                preferred_element_type=jnp.float32) + bq_ref[...]
    q = q * scale                                                     # fold softmax scale into q

    # --- Per-head attention with the output projection folded in -------------
    acc = jnp.zeros((tq, D), jnp.float32)
    for h in range(n_heads):                                          # static unroll, H is small
        qh = q[:, h * E:(h + 1) * E].astype(MXU_DTYPE)                # (tq, E)
        kh = k_scr[:, h * E:(h + 1) * E]                              # (L, E) bf16
        vh = v_scr[:, h * E:(h + 1) * E]                              # (L, E) bf16
        s = jax.lax.dot_general(qh, kh, (((1,), (1,)), ((), ())),
                                preferred_element_type=jnp.float32)   # (tq, L)
        m = jnp.max(s, axis=-1, keepdims=True)
        if soft_bf16:
            p = jnp.exp((s - m).astype(jnp.bfloat16))                 # bf16 EUP path
            l = jnp.sum(p.astype(jnp.float32), axis=-1, keepdims=True)
        else:
            p = jnp.exp(s - m)
            l = jnp.sum(p, axis=-1, keepdims=True)
        inv_l = pl.reciprocal(l, approx=True)                         # (tq, 1) f32

        if out_attn:
            p_n = p * inv_l                                           # normalized, f32
            attn_ref[0, h] = p_n.astype(attn_ref.dtype)
            pv = jnp.dot(p_n.astype(MXU_DTYPE), vh,
                         preferred_element_type=jnp.float32)          # (tq, E)
        else:
            pm = p if soft_bf16 else p.astype(MXU_DTYPE)
            pv = jnp.dot(pm, vh, preferred_element_type=jnp.float32) * inv_l

        # Fold out-projection: acc += (p @ v_h) @ Wo[h*E:(h+1)*E, :]   (lane-dense)
        acc = acc + jnp.dot(pv.astype(MXU_DTYPE), wo_ref[h * E:(h + 1) * E, :],
                            preferred_element_type=jnp.float32)

    # --- residual + LayerNorm1 ------------------------------------------------
    x1 = x_tile + acc + bo_ref[...]
    x1 = _ln(x1, ln1_g_ref[...], ln1_b_ref[...], eps)

    # --- fused FFN: conv1x1 -> relu -> conv1x1 (tq x d_ff stays on-chip) ------
    y = jnp.dot(x1.astype(MXU_DTYPE), w1_ref[...],
                preferred_element_type=jnp.float32) + b1_ref[...]
    y = jnp.maximum(y, 0.0)
    x2 = x1 + jnp.dot(y.astype(MXU_DTYPE), w2_ref[...],
                      preferred_element_type=jnp.float32) + b2_ref[...]
    x2 = _ln(x2, ln2_g_ref[...], ln2_b_ref[...], eps)

    # --- optional fused final encoder LayerNorm (last layer only) ------------
    if apply_final_norm:
        x2 = _ln(x2, fn_g_ref[...], fn_b_ref[...], eps)

    o_ref[0] = x2


def _pick_query_tile(L):
    for cand in (256, 128, 64, 32, 16, 8):
        if cand <= L and L % cand == 0:
            return cand
    return L


def encoder_layer(x, p, n_heads, output_attention=False, final_norm=None, eps=1e-5):
    """One fused EncoderLayer. x: (B, L, D) f32.  final_norm=(gamma, beta) fuses the
    encoder's terminal LayerNorm into this layer's kernel."""
    B, L, D = x.shape
    d_ff = p["w1"].shape[1]
    E = D // n_heads
    scale = 1.0 / math.sqrt(E)
    tq = _pick_query_tile(L)
    n_qt = L // tq

    apply_final_norm = final_norm is not None
    if apply_final_norm:
        fn_g = final_norm[0].reshape(1, D).astype(jnp.float32)
        fn_b = final_norm[1].reshape(1, D).astype(jnp.float32)
    else:
        fn_g = jnp.ones((1, D), jnp.float32)
        fn_b = jnp.zeros((1, D), jnp.float32)

    # Weights / biases / LN params: whole array resident in VMEM, no pipelining
    # (single copy instead of two pipeline buffers).
    res = pl.BlockSpec(memory_space=pltpu.MemorySpace.VMEM)
    in_specs = [pl.BlockSpec((1, L, D), lambda b, qi: (b, 0, 0))] + [res] * 16
    args = (x, p["wq"], p["bq"], p["wkv"], p["bkv"], p["wo"], p["bo"],
            p["ln1_g"], p["ln1_b"], p["w1"], p["b1"], p["w2"], p["b2"],
            p["ln2_g"], p["ln2_b"], fn_g, fn_b)

    x_spec = pl.BlockSpec((1, tq, D), lambda b, qi: (b, qi, 0))
    x_shape = jax.ShapeDtypeStruct((B, L, D), jnp.float32)
    attn_dtype = jnp.bfloat16
    if output_attention:
        out_shape = (x_shape,
                     jax.ShapeDtypeStruct((B, n_heads, L, L), attn_dtype))
        out_specs = (x_spec,
                     pl.BlockSpec((1, n_heads, tq, L), lambda b, qi: (b, 0, qi, 0)))
    else:
        out_shape = x_shape
        out_specs = x_spec

    bf16_softmax = _default_bf16_softmax()
    kernel = functools.partial(
        _encoder_layer_kernel, n_heads=n_heads, scale=scale, eps=eps,
        out_attn=output_attention, bf16_softmax=bf16_softmax,
        apply_final_norm=apply_final_norm)

    # --- VMEM budget (weights single-buffered, pipelined I/O double-buffered,
    #     scratch, and in-kernel temporaries) ----------------------------------
    wb = 2  # bf16 weight bytes
    weight_bytes = (D * D + D * 2 * D + D * D + D * d_ff + d_ff * D) * wb
    small_bytes = (D + 2 * D + D + d_ff + D + 8 * D) * 4            # biases + LN params
    io_bytes = 2 * (L * D * 4) + 2 * (tq * D * 4)
    if output_attention:
        io_bytes += 2 * n_heads * tq * L * jnp.dtype(attn_dtype).itemsize
    scratch_bytes = 2 * L * D * jnp.dtype(MXU_DTYPE).itemsize
    temp_bytes = (L * 2 * D * 4        # kv projection result (f32)
                  + 4 * tq * D * 4     # q / acc / x1 / x2
                  + tq * L * 8         # score tile + exp tile
                  + tq * d_ff * 4)     # FFN activation
    est = weight_bytes + small_bytes + io_bytes + scratch_bytes + temp_bytes
    vmem_cap = _vmem_capacity_bytes()
    limit = min(max(int(est * 1.4) + (4 << 20), 32 << 20), int(vmem_cap * 0.88))

    return pl.pallas_call(
        kernel,
        out_shape=out_shape,
        grid=(B, n_qt),
        in_specs=in_specs,
        out_specs=out_specs,
        scratch_shapes=[pltpu.VMEM((L, D), MXU_DTYPE),   # K (whole sequence, this batch)
                        pltpu.VMEM((L, D), MXU_DTYPE)],  # V
        compiler_params=pltpu.CompilerParams(
            dimension_semantics=("parallel", "arbitrary"),
            vmem_limit_bytes=limit),
    )(*args)


# ----------------------------------------------------------------------------
# Encoder forward (final LayerNorm fused into the last layer's kernel)
# ----------------------------------------------------------------------------

def encoder_forward(x, params, n_heads, attn_mask=None, output_attention=False):
    """Matches Encoder.forward(x, attn_mask) with conv_layers=None and a norm_layer."""
    # TODO(synk): attn_mask is None for encoder self-attention (mask_flag=False); masking not applied.
    attns = []
    layers = params["layers"]
    n_layers = len(layers)
    for i, layer_params in enumerate(layers):
        fused_norm = (params["norm_g"], params["norm_b"]) if i == n_layers - 1 else None
        out = encoder_layer(x, layer_params, n_heads,
                            output_attention=output_attention,
                            final_norm=fused_norm)
        if output_attention:
            x, attn = out
        else:
            x, attn = out, None
        attns.append(attn)
    return x, attns


# ----------------------------------------------------------------------------
# Deterministic parameter init (matmul weights bf16; biases / LN params f32)
# ----------------------------------------------------------------------------

def init_params(key, n_layers, d_model, d_ff):
    layers = []
    for _ in range(n_layers):
        keys = jax.random.split(key, 12)
        key = keys[0]

        def w(k, shape):
            return (0.02 * jax.random.normal(k, shape)).astype(jnp.float32)

        wk_ = w(keys[2], (d_model, d_model))
        wv_ = w(keys[3], (d_model, d_model))
        layer = {
            "wq": w(keys[1], (d_model, d_model)).astype(MXU_DTYPE),
            "bq": 0.01 * jax.random.normal(keys[7], (1, d_model), jnp.float32),
            "wkv": jnp.concatenate([wk_, wv_], axis=1).astype(MXU_DTYPE),   # (D, 2D)
            "bkv": 0.01 * jax.random.normal(keys[8], (1, 2 * d_model), jnp.float32),
            "wo": w(keys[4], (d_model, d_model)).astype(MXU_DTYPE),
            "bo": 0.01 * jax.random.normal(keys[9], (1, d_model), jnp.float32),
            "w1": w(keys[5], (d_model, d_ff)).astype(MXU_DTYPE),
            "b1": 0.01 * jax.random.normal(keys[10], (1, d_ff), jnp.float32),
            "w2": w(keys[6], (d_ff, d_model)).astype(MXU_DTYPE),
            "b2": 0.01 * jax.random.normal(keys[11], (1, d_model), jnp.float32),
            "ln1_g": jnp.ones((1, d_model), jnp.float32),
            "ln1_b": jnp.zeros((1, d_model), jnp.float32),
            "ln2_g": jnp.ones((1, d_model), jnp.float32),
            "ln2_b": jnp.zeros((1, d_model), jnp.float32),
        }
        layers.append(layer)
    return {
        "layers": layers,
        "norm_g": jnp.ones((d_model,), jnp.float32),
        "norm_b": jnp.zeros((d_model,), jnp.float32),
    }


if __name__ == "__main__":
    B, L, D, H = 2, 8, 32, 4       # batch, seq_len, d_model, n_heads
    d_ff = 4 * D
    n_layers = 2

    key = jax.random.PRNGKey(0)
    kx, kp = jax.random.split(key)
    x = jax.random.normal(kx, (B, L, D), dtype=jnp.float32)
    params = init_params(kp, n_layers, D, d_ff)

    # Performance default: no attention-map writeback.
    out, attns = encoder_forward(x, params, n_heads=H)           # output_attention=False
    out = jax.block_until_ready(out)
    assert out.shape == (B, L, D)
    assert len(attns) == n_layers and all(a is None for a in attns)
    assert bool(jnp.all(jnp.isfinite(out)))

    # Diagnostic path: attention maps requested (stored bf16).
    out_a, attns_a = encoder_forward(x, params, n_heads=H, output_attention=True)
    out_a = jax.block_until_ready(out_a)
    for a in attns_a:
        jax.block_until_ready(a)
    assert out_a.shape == (B, L, D)
    assert len(attns_a) == n_layers and attns_a[0].shape == (B, H, L, L)
    assert bool(jnp.all(jnp.isfinite(out_a)))
    # Both paths compute the same encoder output (up to bf16-softmax rounding).
    assert bool(jnp.max(jnp.abs(out - out_a)) < 0.2)

    print("KERNEL_OK")
</pallas_src>

<mosaic_0001>
module attributes {stable_mosaic.version = 11 : i64} {
  func.func @_encoder_layer_kernel(%arg0: i32, %arg1: i32, %arg2: memref<1x8x32xf32, #tpu.memory_space<vmem>>, %arg3: memref<32x32xbf16, #tpu.memory_space<vmem>>, %arg4: memref<1x32xf32, #tpu.memory_space<vmem>>, %arg5: memref<32x64xbf16, #tpu.memory_space<vmem>>, %arg6: memref<1x64xf32, #tpu.memory_space<vmem>>, %arg7: memref<32x32xbf16, #tpu.memory_space<vmem>>, %arg8: memref<1x32xf32, #tpu.memory_space<vmem>>, %arg9: memref<1x32xf32, #tpu.memory_space<vmem>>, %arg10: memref<1x32xf32, #tpu.memory_space<vmem>>, %arg11: memref<32x128xbf16, #tpu.memory_space<vmem>>, %arg12: memref<1x128xf32, #tpu.memory_space<vmem>>, %arg13: memref<128x32xbf16, #tpu.memory_space<vmem>>, %arg14: memref<1x32xf32, #tpu.memory_space<vmem>>, %arg15: memref<1x32xf32, #tpu.memory_space<vmem>>, %arg16: memref<1x32xf32, #tpu.memory_space<vmem>>, %arg17: memref<1x32xf32, #tpu.memory_space<vmem>>, %arg18: memref<1x32xf32, #tpu.memory_space<vmem>>, %arg19: memref<1x8x32xf32, #tpu.memory_space<vmem>>, %arg20: memref<8x32xbf16, #tpu.memory_space<vmem>>, %arg21: memref<8x32xbf16, #tpu.memory_space<vmem>>) attributes {dimension_semantics = [#tpu.dimension_semantics<parallel>, #tpu.dimension_semantics<arbitrary>], iteration_bounds = array<i64: 2, 1>, scalar_prefetch = 0 : i64, scratch_operands = 2 : i64, tpu.core_type = #tpu.core_type<tc>, window_params = [{transform_indices = @transform_0, window_bounds = array<i64: 1, 8, 32>}, {pipeline_mode = #tpu.pipeline_mode<synchronous>, transform_indices = @transform_1, window_bounds = array<i64: 32, 32>}, {pipeline_mode = #tpu.pipeline_mode<synchronous>, transform_indices = @transform_2, window_bounds = array<i64: 1, 32>}, {pipeline_mode = #tpu.pipeline_mode<synchronous>, transform_indices = @transform_3, window_bounds = array<i64: 32, 64>}, {pipeline_mode = #tpu.pipeline_mode<synchronous>, transform_indices = @transform_4, window_bounds = array<i64: 1, 64>}, {pipeline_mode = #tpu.pipeline_mode<synchronous>, transform_indices = @transform_5, window_bounds = array<i64: 32, 32>}, {pipeline_mode = #tpu.pipeline_mode<synchronous>, transform_indices = @transform_6, window_bounds = array<i64: 1, 32>}, {pipeline_mode = #tpu.pipeline_mode<synchronous>, transform_indices = @transform_7, window_bounds = array<i64: 1, 32>}, {pipeline_mode = #tpu.pipeline_mode<synchronous>, transform_indices = @transform_8, window_bounds = array<i64: 1, 32>}, {pipeline_mode = #tpu.pipeline_mode<synchronous>, transform_indices = @transform_9, window_bounds = array<i64: 32, 128>}, {pipeline_mode = #tpu.pipeline_mode<synchronous>, transform_indices = @transform_10, window_bounds = array<i64: 1, 128>}, {pipeline_mode = #tpu.pipeline_mode<synchronous>, transform_indices = @transform_11, window_bounds = array<i64: 128, 32>}, {pipeline_mode = #tpu.pipeline_mode<synchronous>, transform_indices = @transform_12, window_bounds = array<i64: 1, 32>}, {pipeline_mode = #tpu.pipeline_mode<synchronous>, transform_indices = @transform_13, window_bounds = array<i64: 1, 32>}, {pipeline_mode = #tpu.pipeline_mode<synchronous>, transform_indices = @transform_14, window_bounds = array<i64: 1, 32>}, {pipeline_mode = #tpu.pipeline_mode<synchronous>, transform_indices = @transform_15, window_bounds = array<i64: 1, 32>}, {pipeline_mode = #tpu.pipeline_mode<synchronous>, transform_indices = @transform_16, window_bounds = array<i64: 1, 32>}, {transform_indices = @transform_17, window_bounds = array<i64: 1, 8, 32>}]} {
    %c0_i32 = arith.constant 0 : i32
    %0 = arith.cmpi eq, %arg1, %c0_i32 : i32
    %1 = arith.extui %0 : i1 to i32
    %c0_i32_0 = arith.constant 0 : i32
    %2 = arith.cmpi ne, %1, %c0_i32_0 : i32
    scf.if %2 {
      %c0_83 = arith.constant 0 : index
      %c0_84 = arith.constant 0 : index
      %c0_85 = arith.constant 0 : index
      %175 = vector.load %arg2[%c0_83, %c0_84, %c0_85] : memref<1x8x32xf32, #tpu.memory_space<vmem>>, vector<1x8x32xf32>
      %176 = vector.shape_cast %175 : vector<1x8x32xf32> to vector<8x32xf32>
      %177 = arith.truncf %176 : vector<8x32xf32> to vector<8x32xbf16>
      %c0_86 = arith.constant 0 : index
      %c0_87 = arith.constant 0 : index
      %178 = vector.load %arg5[%c0_86, %c0_87] : memref<32x64xbf16, #tpu.memory_space<vmem>>, vector<32x64xbf16>
      %cst_88 = arith.constant dense<0.000000e+00> : vector<8x64xf32>
      %179 = tpu.matmul %177, %178, %cst_88 {dimension_numbers = #tpu.dot_dimension_numbers<[1], [0], [0], [1], [0, 0, 1, 1], [], []>} : vector<8x32xbf16>, vector<32x64xbf16>, vector<8x64xf32> -> vector<8x64xf32>
      %c0_89 = arith.constant 0 : index
      %c0_90 = arith.constant 0 : index
      %180 = vector.load %arg6[%c0_89, %c0_90] : memref<1x64xf32, #tpu.memory_space<vmem>>, vector<1x64xf32>
      %181 = vector.broadcast %180 : vector<1x64xf32> to vector<8x64xf32>
      %182 = arith.addf %179, %181 : vector<8x64xf32>
      %183 = vector.extract_strided_slice %182 {offsets = [0, 0], sizes = [8, 32], strides = [1, 1]} : vector<8x64xf32> to vector<8x32xf32>
      %184 = arith.truncf %183 : vector<8x32xf32> to vector<8x32xbf16>
      %c0_91 = arith.constant 0 : index
      %c0_92 = arith.constant 0 : index
      %185 = vector.load %arg20[%c0_91, %c0_92] : memref<8x32xbf16, #tpu.memory_space<vmem>>, vector<8x32xbf16>
      tpu.vector_store %arg20[%c0_91, %c0_92], %184 {strides = array<i32>} : memref<8x32xbf16, #tpu.memory_space<vmem>>, vector<8x32xbf16>,
      %186 = vector.extract_strided_slice %182 {offsets = [0, 32], sizes = [8, 32], strides = [1, 1]} : vector<8x64xf32> to vector<8x32xf32>
      %187 = arith.truncf %186 : vector<8x32xf32> to vector<8x32xbf16>
      %c0_93 = arith.constant 0 : index
      %c0_94 = arith.constant 0 : index
      %188 = vector.load %arg21[%c0_93, %c0_94] : memref<8x32xbf16, #tpu.memory_space<vmem>>, vector<8x32xbf16>
      tpu.vector_store %arg21[%c0_93, %c0_94], %187 {strides = array<i32>} : memref<8x32xbf16, #tpu.memory_space<vmem>>, vector<8x32xbf16>,
    } else {
    }
    %c8_i32 = arith.constant 8 : i32
    %3 = arith.muli %arg1, %c8_i32 : i32
    %4 = tpu.assume_multiple %3, 8 : i32
    %c0 = arith.constant 0 : index
    %5 = arith.index_cast %4 : i32 to index
    %c0_1 = arith.constant 0 : index
    %6 = vector.load %arg2[%c0, %5, %c0_1] : memref<1x8x32xf32, #tpu.memory_space<vmem>>, vector<1x8x32xf32>
    %7 = vector.shape_cast %6 : vector<1x8x32xf32> to vector<8x32xf32>
    %8 = arith.truncf %7 : vector<8x32xf32> to vector<8x32xbf16>
    %c0_2 = arith.constant 0 : index
    %c0_3 = arith.constant 0 : index
    %9 = vector.load %arg3[%c0_2, %c0_3] : memref<32x32xbf16, #tpu.memory_space<vmem>>, vector<32x32xbf16>
    %cst = arith.constant dense<0.000000e+00> : vector<8x32xf32>
    %10 = tpu.matmul %8, %9, %cst {dimension_numbers = #tpu.dot_dimension_numbers<[1], [0], [0], [1], [0, 0, 1, 1], [], []>} : vector<8x32xbf16>, vector<32x32xbf16>, vector<8x32xf32> -> vector<8x32xf32>
    %c0_4 = arith.constant 0 : index
    %c0_5 = arith.constant 0 : index
    %11 = vector.load %arg4[%c0_4, %c0_5] : memref<1x32xf32, #tpu.memory_space<vmem>>, vector<1x32xf32>
    %12 = vector.broadcast %11 : vector<1x32xf32> to vector<8x32xf32>
    %13 = arith.addf %10, %12 : vector<8x32xf32>
    %cst_6 = arith.constant 0.353553385 : f32
    %14 = vector.broadcast %cst_6 : f32 to vector<8x32xf32>
    %15 = arith.mulf %13, %14 : vector<8x32xf32>
    %cst_7 = arith.constant 0.000000e+00 : f32
    %16 = vector.broadcast %cst_7 : f32 to vector<8x32xf32>
    %17 = vector.extract_strided_slice %15 {offsets = [0, 0], sizes = [8, 8], strides = [1, 1]} : vector<8x32xf32> to vector<8x8xf32>
    %18 = arith.truncf %17 : vector<8x8xf32> to vector<8x8xbf16>
    %c0_8 = arith.constant 0 : index
    %c0_9 = arith.constant 0 : index
    %19 = vector.load %arg20[%c0_8, %c0_9] : memref<8x32xbf16, #tpu.memory_space<vmem>>, vector<8x8xbf16>
    %c0_10 = arith.constant 0 : index
    %c0_11 = arith.constant 0 : index
    %20 = vector.load %arg21[%c0_10, %c0_11] : memref<8x32xbf16, #tpu.memory_space<vmem>>, vector<8x8xbf16>
    %cst_12 = arith.constant dense<0.000000e+00> : vector<8x8xf32>
    %21 = tpu.matmul %18, %19, %cst_12 {dimension_numbers = #tpu.dot_dimension_numbers<[1], [1], [0], [0], [0, 0, 1, 0], [], []>} : vector<8x8xbf16>, vector<8x8xbf16>, vector<8x8xf32> -> vector<8x8xf32>
    %cst_13 = arith.constant dense<0xFF800000> : vector<8xf32>
    %22 = vector.multi_reduction <maximumf>, %21, %cst_13 [1] : vector<8x8xf32> to vector<8xf32>
    %23 = vector.shape_cast %22 : vector<8xf32> to vector<8x1xf32>
    %24 = vector.broadcast %23 : vector<8x1xf32> to vector<8x8xf32>
    %25 = arith.subf %21, %24 : vector<8x8xf32>
    %26 = math.exp %25 : vector<8x8xf32>
    %cst_14 = arith.constant dense<0.000000e+00> : vector<8xf32>
    %27 = vector.multi_reduction <add>, %26, %cst_14 [1] : vector<8x8xf32> to vector<8xf32>
    %28 = vector.shape_cast %27 : vector<8xf32> to vector<8x1xf32>
    %29 = tpu.reciprocal %28 {approx = true} : vector<8x1xf32> -> vector<8x1xf32>
    %30 = arith.truncf %26 : vector<8x8xf32> to vector<8x8xbf16>
    %cst_15 = arith.constant dense<0.000000e+00> : vector<8x8xf32>
    %31 = tpu.matmul %30, %20, %cst_15 {dimension_numbers = #tpu.dot_dimension_numbers<[1], [0], [0], [1], [0, 0, 1, 1], [], []>} : vector<8x8xbf16>, vector<8x8xbf16>, vector<8x8xf32> -> vector<8x8xf32>
    %32 = vector.broadcast %29 : vector<8x1xf32> to vector<8x8xf32>
    %33 = arith.mulf %31, %32 : vector<8x8xf32>
    %34 = arith.truncf %33 : vector<8x8xf32> to vector<8x8xbf16>
    %c0_16 = arith.constant 0 : index
    %c0_17 = arith.constant 0 : index
    %35 = vector.load %arg7[%c0_16, %c0_17] : memref<32x32xbf16, #tpu.memory_space<vmem>>, vector<8x32xbf16>
    %cst_18 = arith.constant dense<0.000000e+00> : vector<8x32xf32>
    %36 = tpu.matmul %34, %35, %cst_18 {dimension_numbers = #tpu.dot_dimension_numbers<[1], [0], [0], [1], [0, 0, 1, 1], [], []>} : vector<8x8xbf16>, vector<8x32xbf16>, vector<8x32xf32> -> vector<8x32xf32>
    %37 = arith.addf %16, %36 : vector<8x32xf32>
    %38 = vector.extract_strided_slice %15 {offsets = [0, 8], sizes = [8, 8], strides = [1, 1]} : vector<8x32xf32> to vector<8x8xf32>
    %39 = arith.truncf %38 : vector<8x8xf32> to vector<8x8xbf16>
    %c0_19 = arith.constant 0 : index
    %c8 = arith.constant 8 : index
    %40 = vector.load %arg20[%c0_19, %c8] : memref<8x32xbf16, #tpu.memory_space<vmem>>, vector<8x8xbf16>
    %c0_20 = arith.constant 0 : index
    %c8_21 = arith.constant 8 : index
    %41 = vector.load %arg21[%c0_20, %c8_21] : memref<8x32xbf16, #tpu.memory_space<vmem>>, vector<8x8xbf16>
    %cst_22 = arith.constant dense<0.000000e+00> : vector<8x8xf32>
    %42 = tpu.matmul %39, %40, %cst_22 {dimension_numbers = #tpu.dot_dimension_numbers<[1], [1], [0], [0], [0, 0, 1, 0], [], []>} : vector<8x8xbf16>, vector<8x8xbf16>, vector<8x8xf32> -> vector<8x8xf32>
    %cst_23 = arith.constant dense<0xFF800000> : vector<8xf32>
    %43 = vector.multi_reduction <maximumf>, %42, %cst_23 [1] : vector<8x8xf32> to vector<8xf32>
    %44 = vector.shape_cast %43 : vector<8xf32> to vector<8x1xf32>
    %45 = vector.broadcast %44 : vector<8x1xf32> to vector<8x8xf32>
    %46 = arith.subf %42, %45 : vector<8x8xf32>
    %47 = math.exp %46 : vector<8x8xf32>
    %cst_24 = arith.constant dense<0.000000e+00> : vector<8xf32>
    %48 = vector.multi_reduction <add>, %47, %cst_24 [1] : vector<8x8xf32> to vector<8xf32>
    %49 = vector.shape_cast %48 : vector<8xf32> to vector<8x1xf32>
    %50 = tpu.reciprocal %49 {approx = true} : vector<8x1xf32> -> vector<8x1xf32>
    %51 = arith.truncf %47 : vector<8x8xf32> to vector<8x8xbf16>
    %cst_25 = arith.constant dense<0.000000e+00> : vector<8x8xf32>
    %52 = tpu.matmul %51, %41, %cst_25 {dimension_numbers = #tpu.dot_dimension_numbers<[1], [0], [0], [1], [0, 0, 1, 1], [], []>} : vector<8x8xbf16>, vector<8x8xbf16>, vector<8x8xf32> -> vector<8x8xf32>
    %53 = vector.broadcast %50 : vector<8x1xf32> to vector<8x8xf32>
    %54 = arith.mulf %52, %53 : vector<8x8xf32>
    %55 = arith.truncf %54 : vector<8x8xf32> to vector<8x8xbf16>
    %c8_26 = arith.constant 8 : index
    %c0_27 = arith.constant 0 : index
    %56 = vector.load %arg7[%c8_26, %c0_27] : memref<32x32xbf16, #tpu.memory_space<vmem>>, vector<8x32xbf16>
    %cst_28 = arith.constant dense<0.000000e+00> : vector<8x32xf32>
    %57 = tpu.matmul %55, %56, %cst_28 {dimension_numbers = #tpu.dot_dimension_numbers<[1], [0], [0], [1], [0, 0, 1, 1], [], []>} : vector<8x8xbf16>, vector<8x32xbf16>, vector<8x32xf32> -> vector<8x32xf32>
    %58 = arith.addf %37, %57 : vector<8x32xf32>
    %59 = vector.extract_strided_slice %15 {offsets = [0, 16], sizes = [8, 8], strides = [1, 1]} : vector<8x32xf32> to vector<8x8xf32>
    %60 = arith.truncf %59 : vector<8x8xf32> to vector<8x8xbf16>
    %c0_29 = arith.constant 0 : index
    %c16 = arith.constant 16 : index
    %61 = vector.load %arg20[%c0_29, %c16] : memref<8x32xbf16, #tpu.memory_space<vmem>>, vector<8x8xbf16>
    %c0_30 = arith.constant 0 : index
    %c16_31 = arith.constant 16 : index
    %62 = vector.load %arg21[%c0_30, %c16_31] : memref<8x32xbf16, #tpu.memory_space<vmem>>, vector<8x8xbf16>
    %cst_32 = arith.constant dense<0.000000e+00> : vector<8x8xf32>
    %63 = tpu.matmul %60, %61, %cst_32 {dimension_numbers = #tpu.dot_dimension_numbers<[1], [1], [0], [0], [0, 0, 1, 0], [], []>} : vector<8x8xbf16>, vector<8x8xbf16>, vector<8x8xf32> -> vector<8x8xf32>
    %cst_33 = arith.constant dense<0xFF800000> : vector<8xf32>
    %64 = vector.multi_reduction <maximumf>, %63, %cst_33 [1] : vector<8x8xf32> to vector<8xf32>
    %65 = vector.shape_cast %64 : vector<8xf32> to vector<8x1xf32>
    %66 = vector.broadcast %65 : vector<8x1xf32> to vector<8x8xf32>
    %67 = arith.subf %63, %66 : vector<8x8xf32>
    %68 = math.exp %67 : vector<8x8xf32>
    %cst_34 = arith.constant dense<0.000000e+00> : vector<8xf32>
    %69 = vector.multi_reduction <add>, %68, %cst_34 [1] : vector<8x8xf32> to vector<8xf32>
    %70 = vector.shape_cast %69 : vector<8xf32> to vector<8x1xf32>
    %71 = tpu.reciprocal %70 {approx = true} : vector<8x1xf32> -> vector<8x1xf32>
    %72 = arith.truncf %68 : vector<8x8xf32> to vector<8x8xbf16>
    %cst_35 = arith.constant dense<0.000000e+00> : vector<8x8xf32>
    %73 = tpu.matmul %72, %62, %cst_35 {dimension_numbers = #tpu.dot_dimension_numbers<[1], [0], [0], [1], [0, 0, 1, 1], [], []>} : vector<8x8xbf16>, vector<8x8xbf16>, vector<8x8xf32> -> vector<8x8xf32>
    %74 = vector.broadcast %71 : vector<8x1xf32> to vector<8x8xf32>
    %75 = arith.mulf %73, %74 : vector<8x8xf32>
    %76 = arith.truncf %75 : vector<8x8xf32> to vector<8x8xbf16>
    %c16_36 = arith.constant 16 : index
    %c0_37 = arith.constant 0 : index
    %77 = vector.load %arg7[%c16_36, %c0_37] : memref<32x32xbf16, #tpu.memory_space<vmem>>, vector<8x32xbf16>
    %cst_38 = arith.constant dense<0.000000e+00> : vector<8x32xf32>
    %78 = tpu.matmul %76, %77, %cst_38 {dimension_numbers = #tpu.dot_dimension_numbers<[1], [0], [0], [1], [0, 0, 1, 1], [], []>} : vector<8x8xbf16>, vector<8x32xbf16>, vector<8x32xf32> -> vector<8x32xf32>
    %79 = arith.addf %58, %78 : vector<8x32xf32>
    %80 = vector.extract_strided_slice %15 {offsets = [0, 24], sizes = [8, 8], strides = [1, 1]} : vector<8x32xf32> to vector<8x8xf32>
    %81 = arith.truncf %80 : vector<8x8xf32> to vector<8x8xbf16>
    %c0_39 = arith.constant 0 : index
    %c24 = arith.constant 24 : index
    %82 = vector.load %arg20[%c0_39, %c24] : memref<8x32xbf16, #tpu.memory_space<vmem>>, vector<8x8xbf16>
    %c0_40 = arith.constant 0 : index
    %c24_41 = arith.constant 24 : index
    %83 = vector.load %arg21[%c0_40, %c24_41] : memref<8x32xbf16, #tpu.memory_space<vmem>>, vector<8x8xbf16>
    %cst_42 = arith.constant dense<0.000000e+00> : vector<8x8xf32>
    %84 = tpu.matmul %81, %82, %cst_42 {dimension_numbers = #tpu.dot_dimension_numbers<[1], [1], [0], [0], [0, 0, 1, 0], [], []>} : vector<8x8xbf16>, vector<8x8xbf16>, vector<8x8xf32> -> vector<8x8xf32>
    %cst_43 = arith.constant dense<0xFF800000> : vector<8xf32>
    %85 = vector.multi_reduction <maximumf>, %84, %cst_43 [1] : vector<8x8xf32> to vector<8xf32>
    %86 = vector.shape_cast %85 : vector<8xf32> to vector<8x1xf32>
    %87 = vector.broadcast %86 : vector<8x1xf32> to vector<8x8xf32>
    %88 = arith.subf %84, %87 : vector<8x8xf32>
    %89 = math.exp %88 : vector<8x8xf32>
    %cst_44 = arith.constant dense<0.000000e+00> : vector<8xf32>
    %90 = vector.multi_reduction <add>, %89, %cst_44 [1] : vector<8x8xf32> to vector<8xf32>
    %91 = vector.shape_cast %90 : vector<8xf32> to vector<8x1xf32>
    %92 = tpu.reciprocal %91 {approx = true} : vector<8x1xf32> -> vector<8x1xf32>
    %93 = arith.truncf %89 : vector<8x8xf32> to vector<8x8xbf16>
    %cst_45 = arith.constant dense<0.000000e+00> : vector<8x8xf32>
    %94 = tpu.matmul %93, %83, %cst_45 {dimension_numbers = #tpu.dot_dimension_numbers<[1], [0], [0], [1], [0, 0, 1, 1], [], []>} : vector<8x8xbf16>, vector<8x8xbf16>, vector<8x8xf32> -> vector<8x8xf32>
    %95 = vector.broadcast %92 : vector<8x1xf32> to vector<8x8xf32>
    %96 = arith.mulf %94, %95 : vector<8x8xf32>
    %97 = arith.truncf %96 : vector<8x8xf32> to vector<8x8xbf16>
    %c24_46 = arith.constant 24 : index
    %c0_47 = arith.constant 0 : index
    %98 = vector.load %arg7[%c24_46, %c0_47] : memref<32x32xbf16, #tpu.memory_space<vmem>>, vector<8x32xbf16>
    %cst_48 = arith.constant dense<0.000000e+00> : vector<8x32xf32>
    %99 = tpu.matmul %97, %98, %cst_48 {dimension_numbers = #tpu.dot_dimension_numbers<[1], [0], [0], [1], [0, 0, 1, 1], [], []>} : vector<8x8xbf16>, vector<8x32xbf16>, vector<8x32xf32> -> vector<8x32xf32>
    %100 = arith.addf %79, %99 : vector<8x32xf32>
    %101 = arith.addf %7, %100 : vector<8x32xf32>
    %c0_49 = arith.constant 0 : index
    %c0_50 = arith.constant 0 : index
    %102 = vector.load %arg8[%c0_49, %c0_50] : memref<1x32xf32, #tpu.memory_space<vmem>>, vector<1x32xf32>
    %103 = vector.broadcast %102 : vector<1x32xf32> to vector<8x32xf32>
    %104 = arith.addf %101, %103 : vector<8x32xf32>
    %c0_51 = arith.constant 0 : index
    %c0_52 = arith.constant 0 : index
    %105 = vector.load %arg9[%c0_51, %c0_52] : memref<1x32xf32, #tpu.memory_space<vmem>>, vector<1x32xf32>
    %c0_53 = arith.constant 0 : index
    %c0_54 = arith.constant 0 : index
    %106 = vector.load %arg10[%c0_53, %c0_54] : memref<1x32xf32, #tpu.memory_space<vmem>>, vector<1x32xf32>
    %cst_55 = arith.constant dense<0.000000e+00> : vector<8xf32>
    %107 = vector.multi_reduction <add>, %104, %cst_55 [1] : vector<8x32xf32> to vector<8xf32>
    %108 = vector.shape_cast %107 : vector<8xf32> to vector<8x1xf32>
    %cst_56 = arith.constant 3.200000e+01 : f32
    %109 = vector.broadcast %cst_56 : f32 to vector<8x1xf32>
    %110 = arith.divf %108, %109 : vector<8x1xf32>
    %111 = vector.broadcast %110 : vector<8x1xf32> to vector<8x32xf32>
    %112 = arith.subf %104, %111 : vector<8x32xf32>
    %113 = vector.broadcast %110 : vector<8x1xf32> to vector<8x32xf32>
    %114 = arith.subf %104, %113 : vector<8x32xf32>
    %115 = arith.mulf %112, %114 : vector<8x32xf32>
    %cst_57 = arith.constant dense<0.000000e+00> : vector<8xf32>
    %116 = vector.multi_reduction <add>, %115, %cst_57 [1] : vector<8x32xf32> to vector<8xf32>
    %117 = vector.shape_cast %116 : vector<8xf32> to vector<8x1xf32>
    %cst_58 = arith.constant 3.200000e+01 : f32
    %118 = vector.broadcast %cst_58 : f32 to vector<8x1xf32>
    %119 = arith.divf %117, %118 : vector<8x1xf32>
    %120 = vector.broadcast %110 : vector<8x1xf32> to vector<8x32xf32>
    %121 = arith.subf %104, %120 : vector<8x32xf32>
    %cst_59 = arith.constant 9.99999974E-6 : f32
    %122 = vector.broadcast %cst_59 : f32 to vector<8x1xf32>
    %123 = arith.addf %119, %122 : vector<8x1xf32>
    %124 = math.rsqrt %123 : vector<8x1xf32>
    %125 = vector.broadcast %124 : vector<8x1xf32> to vector<8x32xf32>
    %126 = arith.mulf %121, %125 : vector<8x32xf32>
    %127 = vector.broadcast %105 : vector<1x32xf32> to vector<8x32xf32>
    %128 = arith.mulf %126, %127 : vector<8x32xf32>
    %129 = vector.broadcast %106 : vector<1x32xf32> to vector<8x32xf32>
    %130 = arith.addf %128, %129 : vector<8x32xf32>
    %131 = arith.truncf %130 : vector<8x32xf32> to vector<8x32xbf16>
    %c0_60 = arith.constant 0 : index
    %c0_61 = arith.constant 0 : index
    %132 = vector.load %arg11[%c0_60, %c0_61] : memref<32x128xbf16, #tpu.memory_space<vmem>>, vector<32x128xbf16>
    %cst_62 = arith.constant dense<0.000000e+00> : vector<8x128xf32>
    %133 = tpu.matmul %131, %132, %cst_62 {dimension_numbers = #tpu.dot_dimension_numbers<[1], [0], [0], [1], [0, 0, 1, 1], [], []>} : vector<8x32xbf16>, vector<32x128xbf16>, vector<8x128xf32> -> vector<8x128xf32>
    %c0_63 = arith.constant 0 : index
    %c0_64 = arith.constant 0 : index
    %134 = vector.load %arg12[%c0_63, %c0_64] : memref<1x128xf32, #tpu.memory_space<vmem>>, vector<1x128xf32>
    %135 = vector.broadcast %134 : vector<1x128xf32> to vector<8x128xf32>
    %136 = arith.addf %133, %135 : vector<8x128xf32>
    %cst_65 = arith.constant 0.000000e+00 : f32
    %137 = vector.broadcast %cst_65 : f32 to vector<8x128xf32>
    %138 = arith.maximumf %136, %137 : vector<8x128xf32>
    %139 = arith.truncf %138 : vector<8x128xf32> to vector<8x128xbf16>
    %c0_66 = arith.constant 0 : index
    %c0_67 = arith.constant 0 : index
    %140 = vector.load %arg13[%c0_66, %c0_67] : memref<128x32xbf16, #tpu.memory_space<vmem>>, vector<128x32xbf16>
    %cst_68 = arith.constant dense<0.000000e+00> : vector<8x32xf32>
    %141 = tpu.matmul %139, %140, %cst_68 {dimension_numbers = #tpu.dot_dimension_numbers<[1], [0], [0], [1], [0, 0, 1, 1], [], []>} : vector<8x128xbf16>, vector<128x32xbf16>, vector<8x32xf32> -> vector<8x32xf32>
    %142 = arith.addf %130, %141 : vector<8x32xf32>
    %c0_69 = arith.constant 0 : index
    %c0_70 = arith.constant 0 : index
    %143 = vector.load %arg14[%c0_69, %c0_70] : memref<1x32xf32, #tpu.memory_space<vmem>>, vector<1x32xf32>
    %144 = vector.broadcast %143 : vector<1x32xf32> to vector<8x32xf32>
    %145 = arith.addf %142, %144 : vector<8x32xf32>
    %c0_71 = arith.constant 0 : index
    %c0_72 = arith.constant 0 : index
    %146 = vector.load %arg15[%c0_71, %c0_72] : memref<1x32xf32, #tpu.memory_space<vmem>>, vector<1x32xf32>
    %c0_73 = arith.constant 0 : index
    %c0_74 = arith.constant 0 : index
    %147 = vector.load %arg16[%c0_73, %c0_74] : memref<1x32xf32, #tpu.memory_space<vmem>>, vector<1x32xf32>
    %cst_75 = arith.constant dense<0.000000e+00> : vector<8xf32>
    %148 = vector.multi_reduction <add>, %145, %cst_75 [1] : vector<8x32xf32> to vector<8xf32>
    %149 = vector.shape_cast %148 : vector<8xf32> to vector<8x1xf32>
    %cst_76 = arith.constant 3.200000e+01 : f32
    %150 = vector.broadcast %cst_76 : f32 to vector<8x1xf32>
    %151 = arith.divf %149, %150 : vector<8x1xf32>
    %152 = vector.broadcast %151 : vector<8x1xf32> to vector<8x32xf32>
    %153 = arith.subf %145, %152 : vector<8x32xf32>
    %154 = vector.broadcast %151 : vector<8x1xf32> to vector<8x32xf32>
    %155 = arith.subf %145, %154 : vector<8x32xf32>
    %156 = arith.mulf %153, %155 : vector<8x32xf32>
    %cst_77 = arith.constant dense<0.000000e+00> : vector<8xf32>
    %157 = vector.multi_reduction <add>, %156, %cst_77 [1] : vector<8x32xf32> to vector<8xf32>
    %158 = vector.shape_cast %157 : vector<8xf32> to vector<8x1xf32>
    %cst_78 = arith.constant 3.200000e+01 : f32
    %159 = vector.broadcast %cst_78 : f32 to vector<8x1xf32>
    %160 = arith.divf %158, %159 : vector<8x1xf32>
    %161 = vector.broadcast %151 : vector<8x1xf32> to vector<8x32xf32>
    %162 = arith.subf %145, %161 : vector<8x32xf32>
    %cst_79 = arith.constant 9.99999974E-6 : f32
    %163 = vector.broadcast %cst_79 : f32 to vector<8x1xf32>
    %164 = arith.addf %160, %163 : vector<8x1xf32>
    %165 = math.rsqrt %164 : vector<8x1xf32>
    %166 = vector.broadcast %165 : vector<8x1xf32> to vector<8x32xf32>
    %167 = arith.mulf %162, %166 : vector<8x32xf32>
    %168 = vector.broadcast %146 : vector<1x32xf32> to vector<8x32xf32>
    %169 = arith.mulf %167, %168 : vector<8x32xf32>
    %170 = vector.broadcast %147 : vector<1x32xf32> to vector<8x32xf32>
    %171 = arith.addf %169, %170 : vector<8x32xf32>
    %c0_80 = arith.constant 0 : index
    %c0_81 = arith.constant 0 : index
    %c0_82 = arith.constant 0 : index
    %172 = vector.load %arg19[%c0_80, %c0_81, %c0_82] : memref<1x8x32xf32, #tpu.memory_space<vmem>>, vector<1x8x32xf32>
    %173 = vector.shape_cast %172 : vector<1x8x32xf32> to vector<8x32xf32>
    %174 = vector.shape_cast %171 : vector<8x32xf32> to vector<1x8x32xf32>
    tpu.vector_store %arg19[%c0_80, %c0_81, %c0_82], %174 {strides = array<i32>} : memref<1x8x32xf32, #tpu.memory_space<vmem>>, vector<1x8x32xf32>,
    return
  }
  func.func @transform_0(%arg0: i32, %arg1: i32) -> (i32, i32, i32) {
    %c0_i32 = arith.constant 0 : i32
    %c0_i32_0 = arith.constant 0 : i32
    %c0_i32_1 = arith.constant 0 : i32
    return %arg0, %c0_i32, %c0_i32_0 : i32, i32, i32
  }
  func.func @transform_1(%arg0: i32, %arg1: i32) -> (i32, i32) {
    %c0_i32 = arith.constant 0 : i32
    %c0_i32_0 = arith.constant 0 : i32
    %c0_i32_1 = arith.constant 0 : i32
    return %c0_i32, %c0_i32_0 : i32, i32
  }
  func.func @transform_2(%arg0: i32, %arg1: i32) -> (i32, i32) {
    %c0_i32 = arith.constant 0 : i32
    %c0_i32_0 = arith.constant 0 : i32
    %c0_i32_1 = arith.constant 0 : i32
    return %c0_i32, %c0_i32_0 : i32, i32
  }
  func.func @transform_3(%arg0: i32, %arg1: i32) -> (i32, i32) {
    %c0_i32 = arith.constant 0 : i32
    %c0_i32_0 = arith.constant 0 : i32
    %c0_i32_1 = arith.constant 0 : i32
    return %c0_i32, %c0_i32_0 : i32, i32
  }
  func.func @transform_4(%arg0: i32, %arg1: i32) -> (i32, i32) {
    %c0_i32 = arith.constant 0 : i32
    %c0_i32_0 = arith.constant 0 : i32
    %c0_i32_1 = arith.constant 0 : i32
    return %c0_i32, %c0_i32_0 : i32, i32
  }
  func.func @transform_5(%arg0: i32, %arg1: i32) -> (i32, i32) {
    %c0_i32 = arith.constant 0 : i32
    %c0_i32_0 = arith.constant 0 : i32
    %c0_i32_1 = arith.constant 0 : i32
    return %c0_i32, %c0_i32_0 : i32, i32
  }
  func.func @transform_6(%arg0: i32, %arg1: i32) -> (i32, i32) {
    %c0_i32 = arith.constant 0 : i32
    %c0_i32_0 = arith.constant 0 : i32
    %c0_i32_1 = arith.constant 0 : i32
    return %c0_i32, %c0_i32_0 : i32, i32
  }
  func.func @transform_7(%arg0: i32, %arg1: i32) -> (i32, i32) {
    %c0_i32 = arith.constant 0 : i32
    %c0_i32_0 = arith.constant 0 : i32
    %c0_i32_1 = arith.constant 0 : i32
    return %c0_i32, %c0_i32_0 : i32, i32
  }
  func.func @transform_8(%arg0: i32, %arg1: i32) -> (i32, i32) {
    %c0_i32 = arith.constant 0 : i32
    %c0_i32_0 = arith.constant 0 : i32
    %c0_i32_1 = arith.constant 0 : i32
    return %c0_i32, %c0_i32_0 : i32, i32
  }
  func.func @transform_9(%arg0: i32, %arg1: i32) -> (i32, i32) {
    %c0_i32 = arith.constant 0 : i32
    %c0_i32_0 = arith.constant 0 : i32
    %c0_i32_1 = arith.constant 0 : i32
    return %c0_i32, %c0_i32_0 : i32, i32
  }
  func.func @transform_10(%arg0: i32, %arg1: i32) -> (i32, i32) {
    %c0_i32 = arith.constant 0 : i32
    %c0_i32_0 = arith.constant 0 : i32
    %c0_i32_1 = arith.constant 0 : i32
    return %c0_i32, %c0_i32_0 : i32, i32
  }
  func.func @transform_11(%arg0: i32, %arg1: i32) -> (i32, i32) {
    %c0_i32 = arith.constant 0 : i32
    %c0_i32_0 = arith.constant 0 : i32
    %c0_i32_1 = arith.constant 0 : i32
    return %c0_i32, %c0_i32_0 : i32, i32
  }
  func.func @transform_12(%arg0: i32, %arg1: i32) -> (i32, i32) {
    %c0_i32 = arith.constant 0 : i32
    %c0_i32_0 = arith.constant 0 : i32
    %c0_i32_1 = arith.constant 0 : i32
    return %c0_i32, %c0_i32_0 : i32, i32
  }
  func.func @transform_13(%arg0: i32, %arg1: i32) -> (i32, i32) {
    %c0_i32 = arith.constant 0 : i32
    %c0_i32_0 = arith.constant 0 : i32
    %c0_i32_1 = arith.constant 0 : i32
    return %c0_i32, %c0_i32_0 : i32, i32
  }
  func.func @transform_14(%arg0: i32, %arg1: i32) -> (i32, i32) {
    %c0_i32 = arith.constant 0 : i32
    %c0_i32_0 = arith.constant 0 : i32
    %c0_i32_1 = arith.constant 0 : i32
    return %c0_i32, %c0_i32_0 : i32, i32
  }
  func.func @transform_15(%arg0: i32, %arg1: i32) -> (i32, i32) {
    %c0_i32 = arith.constant 0 : i32
    %c0_i32_0 = arith.constant 0 : i32
    %c0_i32_1 = arith.constant 0 : i32
    return %c0_i32, %c0_i32_0 : i32, i32
  }
  func.func @transform_16(%arg0: i32, %arg1: i32) -> (i32, i32) {
    %c0_i32 = arith.constant 0 : i32
    %c0_i32_0 = arith.constant 0 : i32
    %c0_i32_1 = arith.constant 0 : i32
    return %c0_i32, %c0_i32_0 : i32, i32
  }
  func.func @transform_17(%arg0: i32, %arg1: i32) -> (i32, i32, i32) {
    %c0_i32 = arith.constant 0 : i32
    %c0_i32_0 = arith.constant 0 : i32
    return %arg0, %arg1, %c0_i32 : i32, i32, i32
  }
}

</mosaic_0001>

<bundles_post_ra>
// kernel: tpu_custom_call.1
= control target key start
LH: loop header
LB: loop body
LE: loop exit
PB: predicated region body
PF: predicated region fallthrough
CT: control target
= control target key end

     0   :  { %s2495_s0 = inlined_call_operand.vmem [shape: f32[2,8,32], index: 0, kind: input, shape index: {}]   ;;  %s2496_s1 = inlined_call_operand.vmem [shape: bf16[32,32], index: 1, kind: input, shape index: {}]   ;;  %s2497_s2 = inlined_call_operand.vmem [shape: f32[1,32], index: 2, kind: input, shape index: {}]   ;;  %s2498_s3 = inlined_call_operand.vmem [shape: bf16[32,64], index: 3, kind: input, shape index: {}]   ;;  %s2499_s4 = inlined_call_operand.vmem [shape: f32[1,64], index: 4, kind: input, shape index: {}]   ;;  %s2500_s5 = inlined_call_operand.vmem [shape: bf16[32,32], index: 5, kind: input, shape index: {}]   ;;  %s2501_s6 = inlined_call_operand.vmem [shape: f32[1,32], index: 6, kind: input, shape index: {}]   ;;  %s2502_s7 = inlined_call_operand.vmem [shape: f32[1,32], index: 7, kind: input, shape index: {}]   ;;  %s2503_s8 = inlined_call_operand.vmem [shape: f32[1,32], index: 8, kind: input, shape index: {}]   ;;  %s2504_s9 = inlined_call_operand.vmem [shape: bf16[32,128], index: 9, kind: input, shape index: {}]   ;;  %s2505_s10 = inlined_call_operand.vmem [shape: f32[1,128], index: 10, kind: input, shape index: {}]   ;;  %s2506_s11 = inlined_call_operand.vmem [shape: bf16[128,32], index: 11, kind: input, shape index: {}]   ;;  %s2507_s12 = inlined_call_operand.vmem [shape: f32[1,32], index: 12, kind: input, shape index: {}]   ;;  %s2508_s13 = inlined_call_operand.vmem [shape: f32[1,32], index: 13, kind: input, shape index: {}]   ;;  %s2509_s14 = inlined_call_operand.vmem [shape: f32[1,32], index: 14, kind: input, shape index: {}]   ;;  %s2510_s15 = inlined_call_operand.vmem [shape: f32[1,32], index: 15, kind: input, shape index: {}]   ;;  %s2511_s16 = inlined_call_operand.vmem [shape: f32[1,32], index: 16, kind: input, shape index: {}]   ;;  %s2512_s17 = inlined_call_operand.hbm [shape: f32[2,8,32], index: 17, kind: output, shape index: {}]  }
   0x1   :  { %2516 = sst [smem:[#allocation9_spill]] %s2495_s0 }
   0x2   :  { %2517 = sst [smem:[#allocation10_spill]] %s2496_s1 }
   0x3   :  { %2518 = sst [smem:[#allocation11_spill]] %s2497_s2 }
   0x4   :  { %2519 = sst [smem:[#allocation12_spill]] %s2498_s3 }
   0x5   :  { %2520 = sst [smem:[#allocation13_spill]] %s2499_s4 }
   0x6   :  { %2521 = sst [smem:[#allocation14_spill]] %s2500_s5 }
   0x7   :  { %22 = vsyncpa [#allocation5], 0 }
   0x8   :  { %24 = vsyncpa [#allocation5 + $0x1], 0  ;;  %s2175_s24 = smov 0   ;;  %s2177_s25 = smov 0  }
   0x9   :  { %s2179_s26 = smov 0   ;;  %s2181_s27 = smov 0  }
   0xa   :  { %s2183_s28 = smov 0   ;;  %s2185_s29 = smov 0  }
   0xb LB: > { %2522 = sst [smem:[#allocation7_spill]] %s2072_s28  ;;  %s1690_s15 = sadd.s32 4294967295, %s2076_s29   ;;  %s2076_s29 = sphi %s2185_s29, %s30_s29   ;;  %s2072_s28 = sphi %s2183_s28, %s2533_s28   ;;  %s2068_s27 = sphi %s2181_s27, %s2532_s27   ;;  %s2064_s26 = sphi %s2179_s26, %s2536_s26   ;;  %s2060_s25 = sphi %s2177_s25, %s2535_s25   ;;  %s2056_s24 = sphi %s2175_s24, %s2534_s24  }
   0xc   : > { %s1691_s16 = sadd.s32 4294967294, %s2076_s29   ;;  %s42_s0 = sadd.s32 1, %s2072_s28 }
   0xd   : > { %s413_s30 = sadd.s32 1, %s2064_s26  ;;  %p44_p0 = scmp.ge.s32.totalorder %s42_s0, 2 }
   0xe   : > { %p423_p1 = scmp.ne.s32.totalorder %s2064_s26, %s2060_s25  ;;  %p424_p2 = scmp.eq.s32.totalorder %s1690_s15, 1 }
   0xf   : > { %p429_p3 = scmp.ne.s32.totalorder %s2060_s25, %s2056_s24  ;;  %s2538_s0 = smov (%p44_p0, %s42_s0), 0 }
  0x10   : > { %2523 = sst [smem:[#allocation8_spill]] %s2538_s0  ;;  %p2215_p4 = por %p424_p2, %p423_p1 }
  0x11   : > { %p430_p5 = scmp.eq.s32.totalorder %s1691_s16, 1  ;;  %s408_s19 = ssub.s32 %s2072_s28, %s2538_s0 }
  0x12   : > { %p1694_p6 = scmp.ge.s32.totalorder %s2076_s29, 1  ;;  %p411_p7 = scmp.eq.s32.totalorder %s408_s19, 0 }
  0x13   : > { %p2222_p8 = por %p430_p5, %p429_p3  ;;  %p503_p9 = scmp.lt.s32.totalorder %s2076_s29, 3 }
  0x14   : > { %s2228_s20 = scalar_select %p411_p7, %s2064_s26, %s413_s30  }
  0x15   : > { %p504_p10 = pnand %p1694_p6, %p503_p9 }
  0x16   : > { %s2526_s3 = sld [smem:[#allocation12_spill]] (!%p504_p10)  ;;  %v2078_v1 = vmov (!%p504_p10), 0.0   ;;  %vm2079_vm0 = vmmov (!%p504_p10), 0   ;;  %p554_p11 = scmp.lt.s32.totalorder (!%p504_p10), %s2068_s27, 1  ;;  %vm588_vm1 = vcmask (!%p504_p10), 261120   ;;  %vm633_vm2 = vcmask (!%p504_p10), 257024  }
  0x17   : > { %507 = sbr.rel (%p504_p10) target bundleno = 3244 (0xcac), region = 88  ;;  %1785 = vmatprep.subr.bf16.mxu0 (!%p504_p10), %v2078_v1  ;;  %1807 = vmatprep.subr.bf16.mxu1 (!%p504_p10), %v2078_v1  ;;  %s2527_s22 = sld [smem:[#allocation10_spill]] (!%p504_p10)  ;;  %vm717_vm3 = vcmask (!%p504_p10), 64512   ;;  %vm778_vm4 = vcmask (!%p504_p10), 1043456  }
  0x18   : > { %1789 = vmatprep.mubr.msk.bf16.mxu0 (!%p504_p10), %vm2079_vm0, %v2078_v1  ;;  %1809 = vmatprep.mubr.msk.bf16.mxu1 (!%p504_p10), %vm2079_vm0, %v2078_v1  ;;  %s2528_s15 = sld [smem:[#allocation9_spill]] (!%p504_p10)  ;;  %s2529_s4 = sld [smem:[#allocation13_spill]] (!%p504_p10) }
  0x19   : > { %s2080_s28 = smov (!%p504_p10), 96   ;;  %s2530_s2 = sld [smem:[#allocation11_spill]] (!%p504_p10) }
  0x1a   : > { %s2081_s21 = smov (!%p504_p10), 120   ;;  %s2082_s23 = smov (!%p504_p10), 112  }
  0x1b   : > { %s2531_s5 = sld [smem:[#allocation14_spill]] (!%p504_p10)  ;;  %s551_s0 = sand.u32 (!%p504_p10), 1, %s2060_s25  }
  0x1c   : > { %v1962_v0 = vld [vmem:[%s2526_s3] sm:$0xff] (!%p504_p10)   ;;  %v1963_v2 = vld [vmem:[%s2526_s3 + $0x8] sm:$0xff] (!%p504_p10)  }
  0x1d   : > { %1786 = vmatpush3.bf16.msra.mxu0 (!%p504_p10), %v1962_v0  ;;  %v1964_v3 = vld [vmem:[%s2527_s22] sm:$0xff] (!%p504_p10)   ;;  %v1965_v6 = vld [vmem:[%s2527_s22 + $0x8] sm:$0xff] (!%p504_p10)  }
  0x1e   : > { %1787 = vmatprep.subr.bf16.mxu0 %v2078_v1  ;;  %s555_s16 = scalar_select %p554_p11, %s2068_s27, 1  ;;  %v1697_v7 = vld [vmem:[%s2529_s4] ss:$0 sm:$0xff] }
  0x1f   : > { %v1702_v14 = vld [vmem:[%s2530_s2] ss:$0 sm:$0xff] }
  0x20   : > { %s1696_s30 = sshll.u32 %s555_s16, 3 }
  0x21   : > { %1788 = vmatpush3.bf16.msra.mxu0 %v1963_v2  ;;  %s557_s3 = scalar_lea.vmem %s2528_s15, %s1696_s30  ;;  %s2083_s15 = smov 104   ;;  %v824_v56 = vld [vmem:[%s2531_s5] sm:$0xf]  ;;  %v943_v58 = vld [vmem:[%s2531_s5 + $0x4] sm:$0xf] }
  0x22   : > { %1793 = vmatprep.subr.bf16.mxu0 %v2078_v1  ;;  %v2252_v4 = vld [vmem:[%s557_s3] sm:$0xff]  ;;  %v994_v57 = vsel %vm778_vm4, %v824_v56, 0  ;;  %v948_v59 = vsel %vm778_vm4, %v943_v58, 0  ;;  %s1606_s30 = scalar_lea.sflag [#allocation5], %s551_s0 }
  0x23   : > { %v564_v5 = vpack.c.bf16 %v2252_v4, %v2252_v4 }
  0x25   : > { %1790 = vmatmul.mubr.msk.bf16.vlgmr.msra.gmra.mrb[0].mxu0 %vm588_vm1, %v564_v5 }
  0x26   : > { %1794 = vmatpush3.bf16.msra.mxu0 %v1964_v3  ;;  %1797 = vmatprep.mubr.msk.bf16.mxu0 %vm2079_vm0, %v2078_v1 }
  0x27   : > { %1795 = vmatprep.subr.bf16.mxu0 %v2078_v1 }
  0x2a   : > { %1796 = vmatpush3.bf16.msra.mxu0 %v1965_v6 }
  0x2b   : > { %1801 = vmatprep.subr.bf16.mxu0 %v2078_v1 }
  0x2d   : > { %1798 = vmatmul.mubr.msk.bf16.vlgmr.msra.gmra.mrb[4].mxu0 %vm588_vm1, %v564_v5 }
  0x2e   : > { %1803 = vmatprep.mubr.msk.bf16.mxu0 %vm2079_vm0, %v2078_v1 }
  0xf8   : > { %v626_v8 = vpop.f32.mrb[0].mxu0 }
  0xf9   : > { %v627_v9 = vadd.f32 %v1697_v7, %v626_v8  ;;  %v1791_v10 = vpop.f32.mrb[1].mxu0 }
  0xfa   : > { %v629_v11 = vpop.f32.mrb[2].mxu0 }
  0xfb   : > { %v632_v12 = vpack.c.bf16 %v627_v9, %v627_v9  ;;  %v1792_v13 = vpop.f32.mrb[3].mxu0 }
  0xfd   : > { %634 = vst.msk [vmem:[#allocation2] sm:$0xf] %vm633_vm2, %v632_v12  ;;  %638 = vrot.lane.b32.xlu1 %v632_v12, %s2080_s28  ;;  %s1695_s28 = sshll.u32 %s551_s0, 3 }
  0xfe   : > { %s553_s16 = scalar_lea.vmem [#allocation4], %s1695_s28 }
  0xff   : > { %s1620_s3 = sshll.u32 %s553_s16, 4  ;;  %s2449_s3 = int_to_ptr.vmem [resolvable:$true] %s1620_s3 }
 0x100   : > { %v707_v15 = vpop.f32.mrb[4].mxu0  ;;  %s1998_s19 = scalar_lea.vmem %s2449_s3, 128 }
 0x101   : > { %v708_v16 = vadd.f32 %v1702_v14, %v707_v15  ;;  %v1799_v17 = vpop.f32.mrb[5].mxu0  ;;  %p1999_p12 = scmp.ne.s32.totalorder %s2449_s3, %s1998_s19 }
 0x102   : > { %v710_v18 = vpop.f32.mrb[6].mxu0 }
 0x103   : > { %v1800_v19 = vpop.f32.mrb[7].mxu0  ;;  %v713_v21 = vmul.f32 0.35355338, %v708_v16  ;;  %p2000_p13 = pnand %p1999_p12, %p2215_p4 }
 0x104   : > { %v715_v20 = vld [vmem:[#allocation2] sm:$0xf] }
 0x105   : > { %v722_v22 = vsel %vm717_vm3, %v715_v20, 0  ;;  %v2275_v23 = vcombine.low %v715_v20, %v715_v20  ;;  %v714_v24 = vpack.c.bf16 %v713_v21, %v713_v21  ;;  %p2001_p0 = pneg %p2000_p13 }
 0x106   : > { %1802 = vmatpush3.bf16.xpose.msra.mxu0 %v722_v22 }
 0x107   : > { %831 = vrot.lane.b32.xlu0 %v2275_v23, %s2081_s21  ;;  %1813 = vmatprep.subr.bf16.mxu0 %v2078_v1 }
 0x10b   : > { %826 = vrot.lane.b32.xlu0 %v714_v24, %s2081_s21 }
 0x10d   : > { %1804 = vmatmul.mubr.msk.bf16.vlgmr.msra.gmra.mrb[8].mxu0 %vm717_vm3, %v714_v24 }
 0x10e   : > { %1815 = vmatprep.mubr.msk.bf16.mxu0 %vm2079_vm0, %v2078_v1 }
 0x16f   : > { %v639_v25 = vpop.permute.xlu1 %638 }
 0x170   : > { %641 = vst.msk [vmem:[#allocation3] sm:$0xf] %vm633_vm2, %v639_v25 }
 0x177   : > { %v716_v26 = vld [vmem:[#allocation3] sm:$0xf] }
 0x178   : > { %v780_v27 = vsel %vm778_vm4, %v716_v26, 0  ;;  %v2294_v41 = vcombine.low %v716_v26, %v716_v26 }
 0x179   : > { %1808 = vmatpush3.bf16.msra.mxu1 %v780_v27  ;;  %v832_v28 = vpop.permute.xlu0 %831 }
 0x17a   : > { %v837_v29 = vsel %vm717_vm3, %v832_v28, 0  ;;  %1819 = vmatprep.subr.bf16.mxu1 %v2078_v1 }
 0x17b   : > { %1814 = vmatpush3.bf16.xpose.msra.mxu0 %v837_v29 }
 0x17c   : > { %1825 = vmatprep.subr.bf16.mxu0 %v2078_v1 }
 0x17d   : > { %v827_v30 = vpop.permute.xlu0 %826 }
 0x182   : > { %1816 = vmatmul.mubr.msk.bf16.vlgmr.msra.gmra.mrb[12].mxu0 %vm717_vm3, %v827_v30 }
 0x183   : > { %1827 = vmatprep.mubr.msk.bf16.mxu0 %vm2079_vm0, %v2078_v1  ;;  %1826 = vmatpush3.bf16.msra.mxu0 %v948_v59 }
 0x184   : > { %1837 = vmatprep.subr.bf16.mxu0 %v2078_v1 }
 0x1e0   : > { %v758_v31 = vpop.f32.mrb[8].mxu0 }
 0x1e1   : > { %v1805_v32 = vpop.f32.mrb[9].mxu0  ;;  %v764_v33 = vsel %vm717_vm3, %v758_v31, -inf }
 0x1e2   : > { %765 = vmax.xlane.f32.xlu1 %v764_v33  ;;  %v761_v34 = vpop.f32.mrb[10].mxu0 }
 0x1e3   : > { %v1806_v35 = vpop.f32.mrb[11].mxu0 }
 0x255   : > { %v873_v36 = vpop.f32.mrb[12].mxu0 }
 0x256   : > { %v1817_v37 = vpop.f32.mrb[13].mxu0  ;;  %v879_v38 = vsel %vm717_vm3, %v873_v36, -inf }
 0x257   : > { %880 = vmax.xlane.f32.xlu0 %v879_v38  ;;  %v876_v39 = vpop.f32.mrb[14].mxu0 }
 0x258   : > { %v1818_v40 = vpop.f32.mrb[15].mxu0 }
 0x26d   : > { %893 = vrot.lane.b32.xlu0 %v2294_v41, %s2081_s21 }
 0x26f   : > { %v766_v42 = vpop.xlane.xlu1 %765 }
 0x270   : > { %v767_v43 = vsub.f32 %v758_v31, %v766_v42 }
 0x271   : > { %1036 = vrot.lane.b32.xlu0 %v714_v24, %s2082_s23 }
 0x272   : > { %v768_v44 = vmul.f32 1.442695, %v767_v43  ;;  %v1147_v43 = vld [vmem:[%s2531_s5 + $0x8] sm:$0xf] }
 0x274   : > { %1978 = vpow2.f32 %v768_v44  ;;  %v1152_v44 = vsel %vm778_vm4, %v1147_v43, 0 }
 0x27e   : > { %v1979_v45 = vpop.eup %1978 }
 0x27f   : > { %v774_v46 = vpack.c.bf16 %v1979_v45, %v1979_v45  ;;  %v770_v55 = vsel %vm717_vm3, %v1979_v45, 0.0 }
 0x281   : > { %1810 = vmatmul.mubr.msk.bf16.vlgmr.msra.gmra.mrb[0].mxu1 %vm717_vm3, %v774_v46 }
 0x282   : > { %1821 = vmatprep.mubr.msk.bf16.mxu1 %vm2079_vm0, %v2078_v1 }
 0x2e4   : > { %v881_v47 = vpop.xlane.xlu0 %880 }
 0x2e5   : > { %v882_v48 = vsub.f32 %v873_v36, %v881_v47 }
 0x2e7   : > { %v883_v49 = vmul.f32 1.442695, %v882_v48 }
 0x2e8   : > { %v894_v50 = vpop.permute.xlu0 %893 }
 0x2e9   : > { %1980 = vpow2.f32 %v883_v49  ;;  %v899_v51 = vsel %vm778_vm4, %v894_v50, 0 }
 0x2ea   : > { %1820 = vmatpush3.bf16.msra.mxu1 %v899_v51 }
 0x2eb   : > { %1831 = vmatprep.subr.bf16.mxu1 %v2078_v1 }
 0x2ec   : > { %v1037_v16 = vpop.permute.xlu0 %1036 }
 0x2f3   : > { %v1981_v52 = vpop.eup %1980 }
 0x2f4   : > { %v885_v53 = vsel %vm717_vm3, %v1981_v52, 0.0  ;;  %v889_v54 = vpack.c.bf16 %v1981_v52, %v1981_v52 }
 0x2f5   : > { %886 = vadd.xlane.f32.xlu1 %v885_v53 }
 0x2f6   : > { %1822 = vmatmul.mubr.msk.bf16.vlgmr.msra.gmra.mrb[4].mxu1 %vm717_vm3, %v889_v54 }
 0x2f7   : > { %1833 = vmatprep.mubr.msk.bf16.mxu1 %vm2079_vm0, %v2078_v1  ;;  %1832 = vmatpush3.bf16.msra.mxu1 %v994_v57 }
 0x2f8   : > { %1843 = vmatprep.subr.bf16.mxu1 %v2078_v1 }
 0x306   : > { %1038 = vrot.lane.b32.xlu1 %v2275_v23, %s2082_s23 }
 0x32a   : > { %771 = vadd.xlane.f32.xlu1 %v770_v55 }
 0x33b   : > { %1197 = vrot.lane.b32.xlu1 %v2275_v23, %s2083_s15 }
 0x33f   : > { %1195 = vrot.lane.b32.xlu1 %v714_v24, %s2083_s15 }
 0x354   : > { %v816_v60 = vpop.f32.mrb[0].mxu1 }
 0x355   : > { %v1811_v61 = vpop.f32.mrb[1].mxu1 }
 0x356   : > { %v819_v62 = vpop.f32.mrb[2].mxu1 }
 0x357   : > { %v1812_v63 = vpop.f32.mrb[3].mxu1 }
 0x382   : > { %v887_v0 = vpop.xlane.xlu1 %886 }
 0x386   : > { %v1039_v2 = vpop.permute.xlu1 %1038 }
 0x387   : > { %v1044_v15 = vsel %vm717_vm3, %v1039_v2, 0  ;;  %v1306_v2 = vld [vmem:[%s2531_s5 + $0xc] sm:$0xf] }
 0x3b7   : > { %v772_v3 = vpop.xlane.xlu1 %771 }
 0x3b8   : > { %1982 = vrcp.f32 %v772_v3  ;;  %v1311_v3 = vsel %vm778_vm4, %v1306_v2, 0 }
 0x3b9   : > { %1984 = vrcp.f32 %v887_v0 }
 0x3bb   : > { %v1198_v37 = vpop.permute.xlu1 %1197 }
 0x3bc   : > { %v1203_v40 = vsel %vm717_vm3, %v1198_v37, 0  ;;  %v1974_v37 = vld [vmem:[%s2506_s11 + $0x20] sm:$0xff]  }
 0x3bf   : > { %v1196_v42 = vpop.permute.xlu1 %1195 }
 0x3c2   : > { %v1983_v5 = vpop.eup %1982 }
 0x3c3   : > { %v822_v6 = vmul.f32 %v1983_v5, %v816_v60  ;;  %v1985_v8 = vpop.eup %1984 }
 0x3c5   : > { %v823_v7 = vpack.c.bf16 %v822_v6, %v822_v6 }
 0x3c7   : > { %1834 = vmatmul.mubr.msk.bf16.vlgmr.msra.gmra.mrb[8].mxu1 %vm717_vm3, %v823_v7 }
 0x3c8   : > { %1845 = vmatprep.mubr.msk.bf16.mxu1 %vm2079_vm0, %v2078_v1 }
 0x3c9   : > { %v935_v9 = vpop.f32.mrb[4].mxu1 }
 0x3ca   : > { %v941_v10 = vmul.f32 %v1985_v8, %v935_v9  ;;  %v1823_v11 = vpop.f32.mrb[5].mxu1 }
 0x3cb   : > { %v938_v12 = vpop.f32.mrb[6].mxu1 }
 0x3cc   : > { %v942_v13 = vpack.c.bf16 %v941_v10, %v941_v10  ;;  %v1824_v14 = vpop.f32.mrb[7].mxu1 }
 0x3ce   : > { %1828 = vmatmul.mubr.msk.bf16.vlgmr.msra.gmra.mrb[16].mxu0 %vm717_vm3, %v942_v13 }
 0x3cf   : > { %1838 = vmatpush3.bf16.xpose.msra.mxu0 %v1044_v15  ;;  %1839 = vmatprep.mubr.msk.bf16.mxu0 %vm2079_vm0, %v2078_v1 }
 0x3d0   : > { %1849 = vmatprep.subr.bf16.mxu0 %v2078_v1 }
 0x3d6   : > { %1840 = vmatmul.mubr.msk.bf16.vlgmr.msra.gmra.mrb[20].mxu0 %vm717_vm3, %v1037_v16 }
 0x3d7   : > { %1851 = vmatprep.mubr.msk.bf16.mxu0 %vm2079_vm0, %v2078_v1  ;;  %1850 = vmatpush3.bf16.msra.mxu0 %v1152_v44  ;;  %v1721_v44 = vld [vmem:[%s2502_s7] ss:$0 sm:$0xff] }
 0x3d8   : > { %1861 = vmatprep.subr.bf16.mxu0 %v2078_v1 }
 0x49a   : > { %v1030_v17 = vpop.f32.mrb[8].mxu1 }
 0x49b   : > { %v1835_v18 = vpop.f32.mrb[9].mxu1 }
 0x49c   : > { %v1033_v19 = vpop.f32.mrb[10].mxu1 }
 0x49d   : > { %v1836_v20 = vpop.f32.mrb[11].mxu1 }
 0x4a1   : > { %v984_v21 = vpop.f32.mrb[16].mxu0 }
 0x4a2   : > { %v2335_v22 = vadd.f32 %v1030_v17, %v984_v21  ;;  %v1829_v23 = vpop.f32.mrb[17].mxu0 }
 0x4a3   : > { %v987_v24 = vpop.f32.mrb[18].mxu0 }
 0x4a4   : > { %v1830_v25 = vpop.f32.mrb[19].mxu0 }
 0x4a9   : > { %v1080_v26 = vpop.f32.mrb[20].mxu0 }
 0x4aa   : > { %v1841_v27 = vpop.f32.mrb[21].mxu0  ;;  %v1086_v28 = vsel %vm717_vm3, %v1080_v26, -inf }
 0x4ab   : > { %1087 = vmax.xlane.f32.xlu0 %v1086_v28  ;;  %v1083_v29 = vpop.f32.mrb[22].mxu0 }
 0x4ac   : > { %v1842_v30 = vpop.f32.mrb[23].mxu0 }
 0x4c1   : > { %1097 = vrot.lane.b32.xlu0 %v2294_v41, %s2082_s23 }
 0x538   : > { %v1088_v31 = vpop.xlane.xlu0 %1087 }
 0x539   : > { %v1089_v32 = vsub.f32 %v1080_v26, %v1088_v31 }
 0x53b   : > { %v1090_v33 = vmul.f32 1.442695, %v1089_v32  ;;  %v1968_v32 = vld [vmem:[%s2504_s9] sm:$0xff]  }
 0x53c   : > { %v1098_v34 = vpop.permute.xlu0 %1097 }
 0x53d   : > { %1986 = vpow2.f32 %v1090_v33  ;;  %v1103_v35 = vsel %vm778_vm4, %v1098_v34, 0  ;;  %v1970_v33 = vld [vmem:[%s2506_s11] sm:$0xff]   ;;  %v1971_v34 = vld [vmem:[%s2506_s11 + $0x8] sm:$0xff]  }
 0x53e   : > { %1844 = vmatpush3.bf16.msra.mxu1 %v1103_v35  ;;  %v1972_v35 = vld [vmem:[%s2506_s11 + $0x10] sm:$0xff]  }
 0x53f   : > { %1855 = vmatprep.subr.bf16.mxu1 %v2078_v1 }
 0x547   : > { %v1987_v36 = vpop.eup %1986 }
 0x548   : > { %v1092_v38 = vsel %vm717_vm3, %v1987_v36, 0.0  ;;  %v1096_v39 = vpack.c.bf16 %v1987_v36, %v1987_v36  ;;  %v1973_v36 = vld [vmem:[%s2506_s11 + $0x18] sm:$0xff]  }
 0x549   : > { %1093 = vadd.xlane.f32.xlu0 %v1092_v38  ;;  %v1975_v38 = vld [vmem:[%s2506_s11 + $0x28] sm:$0xff]  }
 0x54a   : > { %1846 = vmatmul.mubr.msk.bf16.vlgmr.msra.gmra.mrb[12].mxu1 %vm717_vm3, %v1096_v39 }
 0x54b   : > { %1856 = vmatpush3.bf16.xpose.msra.mxu1 %v1203_v40  ;;  %1857 = vmatprep.mubr.msk.bf16.mxu1 %vm2079_vm0, %v2078_v1 }
 0x54c   : > { %1867 = vmatprep.subr.bf16.mxu1 %v2078_v1 }
 0x552   : > { %1858 = vmatmul.mubr.msk.bf16.vlgmr.msra.gmra.mrb[16].mxu1 %vm717_vm3, %v1196_v42 }
 0x553   : > { %1869 = vmatprep.mubr.msk.bf16.mxu1 %vm2079_vm0, %v2078_v1  ;;  %1868 = vmatpush3.bf16.msra.mxu1 %v1311_v3 }
 0x554   : > { %1881 = vmatprep.subr.bf16.mxu1 %v2078_v1 }
 0x55f   : > { %1256 = vrot.lane.b32.xlu0 %v2294_v41, %s2083_s15  ;;  %s1739_s15 = sshll.u32 %s2068_s27, 7  ;;  %s2084_s27 = smov [#allocation4]  }
 0x560   : > { %s2447_s5 = scalar_lea.hbm %s2512_s17, %s1739_s15  ;;  %s2002_s28 = sshll.u32 %s2084_s27, 4  ;;  %s2003_s28 = int_to_ptr.vmem [resolvable:$false] %s2002_s28 }
 0x561   : > { %s2004_s21 = scalar_lea.vmem %s2003_s28, 256  ;;  %p2005_p1 = scmp.lt.s32.totalorder %s2449_s3, %s2003_s28 }
 0x562   : > { %p2006_p2 = scmp.lt.s32.totalorder %s2004_s21, %s1998_s19 }
 0x564   : > { %p2007_p3 = por %p2006_p2, %p2005_p1 }
 0x566   : > { %p2008_p5 = pnand %p2007_p3, %p2001_p0 }
 0x5d6   : > { %v1094_v45 = vpop.xlane.xlu0 %1093 }
 0x5d7   : > { %1988 = vrcp.f32 %v1094_v45 }
 0x5da   : > { %v1257_v50 = vpop.permute.xlu0 %1256 }
 0x5db   : > { %v1262_v41 = vsel %vm778_vm4, %v1257_v50, 0  ;;  %v1976_v50 = vld [vmem:[%s2506_s11 + $0x30] sm:$0xff]  }
 0x5e1   : > { %v1989_v46 = vpop.eup %1988 }
 0x61d   : > { %v1139_v47 = vpop.f32.mrb[12].mxu1 }
 0x61e   : > { %v1145_v48 = vmul.f32 %v1989_v46, %v1139_v47  ;;  %v1847_v49 = vpop.f32.mrb[13].mxu1  ;;  %v1722_v46 = vld [vmem:[%s2503_s8] ss:$0 sm:$0xff] }
 0x61f   : > { %v1142_v51 = vpop.f32.mrb[14].mxu1 }
 0x620   : > { %v1146_v52 = vpack.c.bf16 %v1145_v48, %v1145_v48  ;;  %v1848_v53 = vpop.f32.mrb[15].mxu1  ;;  %v1977_v51 = vld [vmem:[%s2506_s11 + $0x38] sm:$0xff]  }
 0x622   : > { %1852 = vmatmul.mubr.msk.bf16.vlgmr.msra.gmra.mrb[24].mxu0 %vm717_vm3, %v1146_v52  ;;  %v1723_v52 = vld [vmem:[%s2505_s10] ss:$0 sm:$0xff] }
 0x623   : > { %1862 = vmatpush3.bf16.msra.mxu0 %v1262_v41  ;;  %1863 = vmatprep.mubr.msk.bf16.mxu0 %vm2079_vm0, %v2078_v1 }
 0x624   : > { %1873 = vmatprep.subr.bf16.mxu0 %v2078_v1 }
 0x625   : > { %v1239_v54 = vpop.f32.mrb[16].mxu1 }
 0x626   : > { %v1859_v55 = vpop.f32.mrb[17].mxu1  ;;  %v1245_v56 = vsel %vm717_vm3, %v1239_v54, -inf }
 0x627   : > { %1246 = vmax.xlane.f32.xlu1 %v1245_v56  ;;  %v1242_v57 = vpop.f32.mrb[18].mxu1 }
 0x628   : > { %v1860_v58 = vpop.f32.mrb[19].mxu1 }
 0x6b4   : > { %v1247_v59 = vpop.xlane.xlu1 %1246 }
 0x6b5   : > { %v1248_v60 = vsub.f32 %v1239_v54, %v1247_v59 }
 0x6b7   : > { %v1249_v61 = vmul.f32 1.442695, %v1248_v60 }
 0x6b9   : > { %1990 = vpow2.f32 %v1249_v61 }
 0x6c3   : > { %v1991_v62 = vpop.eup %1990 }
 0x6c4   : > { %v1251_v63 = vsel %vm717_vm3, %v1991_v62, 0.0  ;;  %v1255_v0 = vpack.c.bf16 %v1991_v62, %v1991_v62 }
 0x6c5   : > { %1252 = vadd.xlane.f32.xlu1 %v1251_v63 }
 0x6c6   : > { %1864 = vmatmul.mubr.msk.bf16.vlgmr.msra.gmra.mrb[28].mxu0 %vm717_vm3, %v1255_v0 }
 0x6c7   : > { %1877 = vmatprep.mubr.msk.bf16.mxu0 %vm2079_vm0, %v2078_v1  ;;  %1874 = vmatpush3.bf16.msra.mxu0 %v1968_v32 }
 0x6c8   : > { %1875 = vmatprep.subr.bf16.mxu0 %v2078_v1 }
 0x6f5   : > { %v1188_v5 = vpop.f32.mrb[24].mxu0 }
 0x6f6   : > { %v1194_v6 = vadd.f32 %v1188_v5, %v2335_v22  ;;  %v1853_v7 = vpop.f32.mrb[25].mxu0  ;;  %v1720_v22 = vld [vmem:[%s2501_s6] ss:$0 sm:$0xff] }
 0x6f7   : > { %v1191_v8 = vpop.f32.mrb[26].mxu0 }
 0x6f8   : > { %v1854_v9 = vpop.f32.mrb[27].mxu0 }
 0x752   : > { %v1253_v10 = vpop.xlane.xlu1 %1252 }
 0x753   : > { %1992 = vrcp.f32 %v1253_v10 }
 0x75d   : > { %v1993_v11 = vpop.eup %1992 }
 0x799   : > { %v1298_v12 = vpop.f32.mrb[28].mxu0 }
 0x79a   : > { %v1304_v13 = vmul.f32 %v1993_v11, %v1298_v12  ;;  %v1865_v14 = vpop.f32.mrb[29].mxu0 }
 0x79b   : > { %v1301_v15 = vpop.f32.mrb[30].mxu0 }
 0x79c   : > { %v1305_v16 = vpack.c.bf16 %v1304_v13, %v1304_v13  ;;  %v1866_v17 = vpop.f32.mrb[31].mxu0  ;;  %v1736_v13 = vld [vmem:[%s2508_s13] ss:$0 sm:$0xff] }
 0x79d   : > { %v1737_v15 = vld [vmem:[%s2509_s14] ss:$0 sm:$0xff] }
 0x79e   : > { %1870 = vmatmul.mubr.msk.bf16.vlgmr.msra.gmra.mrb[20].mxu1 %vm717_vm3, %v1305_v16 }
 0x79f   : > { %1897 = vmatprep.mubr.msk.bf16.mxu1 %vm2079_vm0, %v2078_v1  ;;  %1882 = vmatpush3.bf16.msra.mxu1 %v1970_v33 }
 0x7a0   : > { %1883 = vmatprep.subr.bf16.mxu1 %v2078_v1 }
 0x7a3   : > { %1884 = vmatpush3.bf16.msra.mxu1 %v1971_v34 }
 0x7a4   : > { %1885 = vmatprep.subr.bf16.mxu1 %v2078_v1 }
 0x7a7   : > { %1886 = vmatpush3.bf16.msra.mxu1 %v1972_v35 }
 0x7a8   : > { %1887 = vmatprep.subr.bf16.mxu1 %v2078_v1 }
 0x7ab   : > { %1888 = vmatpush3.bf16.msra.mxu1 %v1973_v36 }
 0x7ac   : > { %1889 = vmatprep.subr.bf16.mxu1 %v2078_v1 }
 0x7af   : > { %1890 = vmatpush3.bf16.msra.mxu1 %v1974_v37 }
 0x7b0   : > { %1891 = vmatprep.subr.bf16.mxu1 %v2078_v1 }
 0x7b3   : > { %1892 = vmatpush3.bf16.msra.mxu1 %v1975_v38 }
 0x7b4   : > { %1893 = vmatprep.subr.bf16.mxu1 %v2078_v1 }
 0x7b7   : > { %1894 = vmatpush3.bf16.msra.mxu1 %v1976_v50 }
 0x7b8   : > { %1895 = vmatprep.subr.bf16.mxu1 %v2078_v1  ;;  %v1735_v1 = vld [vmem:[%s2507_s12] ss:$0 sm:$0xff] }
 0x7bb   : > { %1896 = vmatpush3.bf16.msra.mxu1 %v1977_v51 }
 0x871   : > { %v1347_v18 = vpop.f32.mrb[20].mxu1 }
 0x872   : > { %v1353_v19 = vadd.f32 %v1347_v18, %v1194_v6  ;;  %v1871_v20 = vpop.f32.mrb[21].mxu1 }
 0x873   : > { %v1350_v21 = vpop.f32.mrb[22].mxu1 }
 0x874   : > { %v1354_v23 = vadd.f32 %v1353_v19, %v2252_v4  ;;  %v1872_v24 = vpop.f32.mrb[23].mxu1  ;;  %v1969_v4 = vld [vmem:[%s2504_s9 + $0x8] sm:$0xff]  }
 0x875   : > { %1876 = vmatpush3.bf16.msra.mxu0 %v1969_v4 }
 0x876   : > { %v1362_v25 = vadd.f32 %v1720_v22, %v1354_v23 }
 0x878   : > { %v1365_v26 = vsel %vm588_vm1, %v1362_v25, 0.0 }
 0x879   : > { %1366 = vadd.xlane.f32.xlu1 %v1365_v26 }
 0x906   : > { %v1367_v27 = vpop.xlane.xlu1 %1366 }
 0x907   : > { %v1369_v28 = vmul.f32 0.03125, %v1367_v27 }
 0x909   : > { %v1370_v29 = vsub.f32 %v1362_v25, %v1369_v28 }
 0x90b   : > { %v1371_v30 = vmul.f32 %v1370_v29, %v1370_v29 }
 0x90d   : > { %v1372_v31 = vsel %vm588_vm1, %v1371_v30, 0.0 }
 0x90e   : > { %1373 = vadd.xlane.f32.xlu1 %v1372_v31 }
 0x99b   : > { %v1374_v39 = vpop.xlane.xlu1 %1373 }
 0x99c   : > { %v1375_v40 = vmul.f32 0.03125, %v1374_v39 }
 0x99e   : > { %v1376_v42 = vadd.f32 1e-05, %v1375_v40 }
 0x9a0   : > { %1994 = vrsqrt.f32 %v1376_v42 }
 0x9aa   : > { %v1995_v43 = vpop.eup %1994 }
 0x9ab   : > { %v1378_v45 = vmul.f32 %v1995_v43, %v1370_v29 }
 0x9ad   : > { %v1385_v47 = vmul.f32 %v1721_v44, %v1378_v45 }
 0x9af   : > { %v1392_v48 = vadd.f32 %v1722_v46, %v1385_v47 }
 0x9b1   : > { %v1393_v49 = vpack.c.bf16 %v1392_v48, %v1392_v48 }
 0x9b3   : > { %1878 = vmatmul.mubr.msk.bf16.vlgmr.msra.gmra.mrb[32].mxu0 %vm588_vm1, %v1393_v49 }
 0xa86   : > { %v1454_v53 = vpop.f32.mrb[32].mxu0 }
 0xa87   : > { %v1455_v41 = vadd.f32 %v1723_v52, %v1454_v53  ;;  %v1879_v54 = vpop.f32.mrb[33].mxu0 }
 0xa88   : > { %v1457_v55 = vpop.f32.mrb[34].mxu0 }
 0xa89   : > { %v1460_v56 = vmax.f32 %v1455_v41, 0.0  ;;  %v1880_v57 = vpop.f32.mrb[35].mxu0 }
 0xa8b   : > { %v1461_v58 = vpack.c.bf16 %v1460_v56, %v1460_v56 }
 0xa8d   : > { %1898 = vmatmul.mubr.bf16.vlgmr.msra.gmra.mrb[24].mxu1 %v1461_v58 }
 0xb60   : > { %v1560_v59 = vpop.f32.mrb[24].mxu1 }
 0xb61   : > { %v1566_v60 = vadd.f32 %v1560_v59, %v1392_v48  ;;  %v1899_v61 = vpop.f32.mrb[25].mxu1 }
 0xb62   : > { %v1563_v62 = vpop.f32.mrb[26].mxu1 }
 0xb63   : > { %v1900_v63 = vpop.f32.mrb[27].mxu1  ;;  %v1574_v0 = vadd.f32 %v1735_v1, %v1566_v60 }
 0xb65   : > { %v1577_v2 = vsel %vm588_vm1, %v1574_v0, 0.0 }
 0xb66   : > { %1578 = vadd.xlane.f32.xlu1 %v1577_v2 }
 0xbf3   : > { %v1579_v3 = vpop.xlane.xlu1 %1578 }
 0xbf4   : > { %v1580_v5 = vmul.f32 0.03125, %v1579_v3 }
 0xbf6   : > { %v1581_v6 = vsub.f32 %v1574_v0, %v1580_v5 }
 0xbf8   : > { %v1582_v7 = vmul.f32 %v1581_v6, %v1581_v6 }
 0xbfa   : > { %v1583_v8 = vsel %vm588_vm1, %v1582_v7, 0.0 }
 0xbfb   : > { %1584 = vadd.xlane.f32.xlu1 %v1583_v8 }
 0xc88   : > { %v1585_v9 = vpop.xlane.xlu1 %1584 }
 0xc89   : > { %v1586_v10 = vmul.f32 0.03125, %v1585_v9 }
 0xc8b   : > { %v1587_v11 = vadd.f32 1e-05, %v1586_v10 }
 0xc8d   : > { %1996 = vrsqrt.f32 %v1587_v11 }
 0xc97   : > { %v1997_v12 = vpop.eup %1996 }
 0xc98   : > { %v1589_v14 = vmul.f32 %v1997_v12, %v1581_v6 }
 0xc9a   : > { %v1596_v16 = vmul.f32 %v1736_v13, %v1589_v14 }
 0xc9c   : > { %v1603_v17 = vadd.f32 %v1737_v15, %v1596_v16 }
 0xc9e   : > { %1604 = vst.msk [vmem:[%s553_s16] sm:$0xff] %vm588_vm1, %v1603_v17 }
 0xc9f   : > { %2011 = shalt.err (!%p2008_p5)
}
 0xca0   : > { %s2012_s2 = scalar_lea.hbm %s2447_s5, 128  ;;  %s2016_s23 = scalar_lea.hbm %s2512_s17, 256 }
 0xca1   : > { %p2013_p6 = scmp.ne.s32.totalorder %s2447_s5, %s2012_s2  ;;  %p2017_p10 = scmp.lt.u32.totalorder %s2447_s5, %s2512_s17 }
 0xca2   : > { %p2018_p11 = scmp.lt.u32.totalorder %s2016_s23, %s2012_s2  ;;  %p2020_p13 = scmp.lt.u32.totalorder %s2012_s2, %s2447_s5 }
 0xca3   : > { %p2014_p7 = pnand %p2013_p6, %p2215_p4 }
 0xca4   : > { %p2019_p12 = por %p2018_p11, %p2017_p10 }
 0xca5   : > { %p2015_p9 = pneg %p2014_p7 }
 0xca6   : > { %p2021_p0 = por %p2020_p13, %p2019_p12 }
 0xca8   : > { %p2022_p1 = pnand %p2021_p0, %p2015_p9 }
 0xcaa   : > { %2025 = shalt.err (!%p2022_p1)
}
 0xcab   : > { %1901 = dma.vmem_to_hbm [thread:$0]  (%p2215_p4), %s2449_s3, 128, %s2447_s5, %s1606_s30  }
 0xcac PF: > { %p1907_p2 = scmp.ge.s32.totalorder %s2076_s29, 2  ;;  %s1632_s19 = sand.u32 1, %s2056_s24  }
 0xcad   : > { %s1633_s27 = scalar_lea.sflag [#allocation5], %s1632_s19 }
 0xcae   : > { %p1904_p3 = pnand %p1907_p2, %p2222_p8 }
 0xcb0   : > { %2051 = dma.done.wait (!%p1904_p3), %s1633_s27, 128  }
 0xcb1   : > { %2053 = vsyncadd (!%p1904_p3), %s1633_s27, 4294967168  ;;  %s30_s29 = sadd.s32 1, %s2076_s29   ;;  %s2532_s27 = sld [smem:[#allocation7_spill]] }
 0xcb2   : > { %p27_p5 = scmp.ge.s32.totalorder %s30_s29, 4   ;;  %s2533_s28 = sld [smem:[#allocation8_spill]] }
 0xcb3   : > { %s2534_s24 = smov %s2060_s25  ;;  %s2535_s25 = smov %s2064_s26 }
 0xcb4   : > { %s2536_s26 = smov %s2228_s20  ;;  %29 = sbr.rel (!%p27_p5) target bundleno = 11 (0xb), region = 128 }
 0xcbb   :  { %1638 = vsyncpa [#allocation5], 1 }
 0xcbc   :  { %1640 = vsyncpa [#allocation5 + $0x1], 1 }

</bundles_post_ra>
